<compile_context>
chip_gen: v7x
topology: tpu7x:2x2x1
jax: 0.10.0
libtpu: 0.0.40
codegen_flags: <defaults>
</compile_context>

<pallas_src>
from functools import partial

import jax
import jax.numpy as jnp
from jax.experimental import pallas as pl
from jax.experimental.pallas import tpu as pltpu

HIDDEN = 30          # hidden width of the PyTorch module (fc1 out / fc2 in)
H_PAD = 128          # hidden padded to a full lane width (30 real + 1 ones + 0s)
OUT_PAD = 128        # lane-dense padded output width (nbAction real + 0s)


def _round_up(x, m):
    return ((x + m - 1) // m) * m


def _mlp_kernel(x_ref, w1_ref, w2_ref, out_ref):
    # Two MXU passes + one VPU max. Biases are already folded into the
    # weights, so there are no broadcasts or bias adds in the hot path.
    h = jnp.dot(x_ref[...], w1_ref[...], preferred_element_type=jnp.float32)
    h = jnp.maximum(h, 0.0)                                   # ReLU
    q = jnp.dot(h, w2_ref[...], preferred_element_type=jnp.float32)
    out_ref[...] = q.astype(out_ref.dtype)                    # (8,128) unmasked store


def fuse_and_pad_params(w1, b1, w2, b2):
    """Fold biases into zero-padded, tile-aligned weight matrices (paid once).

    w1: (inputSize, 30), b1: (30,), w2: (30, nbAction), b2: (nbAction,)
    Returns (w1_pad (IN_PAD, H_PAD), w2_pad (H_PAD, OUT_PAD)).
    """
    in_size, hidden = w1.shape
    nb_action = w2.shape[1]
    assert hidden == HIDDEN and hidden + 1 <= H_PAD and nb_action <= OUT_PAD

    in_pad = _round_up(in_size + 1, 8)                         # +1 ones column

    w1_pad = jnp.zeros((in_pad, H_PAD), jnp.float32)
    w1_pad = w1_pad.at[:in_size, :hidden].set(w1.astype(jnp.float32))
    w1_pad = w1_pad.at[in_size, :hidden].set(b1.astype(jnp.float32))  # b1 via ones col of x
    w1_pad = w1_pad.at[in_size, hidden].set(1.0)               # h[:, hidden] == ReLU(1) == 1

    w2_pad = jnp.zeros((H_PAD, OUT_PAD), jnp.float32)
    w2_pad = w2_pad.at[:hidden, :nb_action].set(w2.astype(jnp.float32))
    w2_pad = w2_pad.at[hidden, :nb_action].set(b2.astype(jnp.float32))  # b2 via ones col of h

    return w1_pad, w2_pad


@partial(jax.jit, static_argnames=("in_size", "nb_action"))
def network_forward(state, w1_pad, w2_pad, *, in_size, nb_action):
    """state: (B, in_size) f32. Returns Q-values (B, nb_action) f32."""
    B = state.shape[0]
    b_pad = _round_up(max(B, 8), 8)
    in_pad = w1_pad.shape[0]

    # Pad the batch/feature dims and append the constant ones column that
    # carries the biases through both matmuls.
    x_pad = jnp.zeros((b_pad, in_pad), jnp.float32)
    x_pad = x_pad.at[:B, :in_size].set(state.astype(jnp.float32))
    x_pad = x_pad.at[:, in_size].set(1.0)

    q_pad = pl.pallas_call(
        _mlp_kernel,
        out_shape=jax.ShapeDtypeStruct((b_pad, OUT_PAD), jnp.float32),
        in_specs=[
            pl.BlockSpec(memory_space=pltpu.MemorySpace.VMEM),
            pl.BlockSpec(memory_space=pltpu.MemorySpace.VMEM),
            pl.BlockSpec(memory_space=pltpu.MemorySpace.VMEM),
        ],
        out_specs=pl.BlockSpec(memory_space=pltpu.MemorySpace.VMEM),
    )(x_pad, w1_pad, w2_pad)

    return q_pad[:B, :nb_action]


def init_params(key, input_size, nb_action, hidden=HIDDEN):
    """Deterministic init mimicking PyTorch nn.Linear default:
    U(-1/sqrt(fan_in), 1/sqrt(fan_in)) for both weights and biases.
    Weights stored transposed, (in_features, out_features)."""
    k1, k2, k3, k4 = jax.random.split(key, 4)
    bound1 = 1.0 / jnp.sqrt(jnp.float32(input_size))
    bound2 = 1.0 / jnp.sqrt(jnp.float32(hidden))
    w1 = jax.random.uniform(k1, (input_size, hidden), jnp.float32, -bound1, bound1)
    b1 = jax.random.uniform(k2, (hidden,), jnp.float32, -bound1, bound1)
    w2 = jax.random.uniform(k3, (hidden, nb_action), jnp.float32, -bound2, bound2)
    b2 = jax.random.uniform(k4, (nb_action,), jnp.float32, -bound2, bound2)
    return w1, b1, w2, b2


if __name__ == "__main__":
    key = jax.random.PRNGKey(0)
    input_size = 5      # e.g. classic self-driving-car DQN state
    nb_action = 3
    batch = 4

    kx, kp = jax.random.split(key)
    state = jax.random.normal(kx, (batch, input_size), dtype=jnp.float32)
    w1, b1, w2, b2 = init_params(kp, input_size, nb_action)

    # One-time: fold biases and pad to tile-aligned shapes.
    w1_pad, w2_pad = fuse_and_pad_params(w1, b1, w2, b2)

    q_values = network_forward(state, w1_pad, w2_pad,
                               in_size=input_size, nb_action=nb_action)
    q_values = jax.block_until_ready(q_values)

    # Reference check in plain JAX (same semantics as the PyTorch forward).
    h_ref = jnp.maximum(state @ w1 + b1, 0.0)
    q_ref = h_ref @ w2 + b2
    assert q_values.shape == (batch, nb_action)
    assert jnp.allclose(q_values, q_ref, atol=1e-5), "mismatch vs reference"

    print("KERNEL_OK")
</pallas_src>

<mosaic_0001>
module attributes {stable_mosaic.version = 11 : i64} {
  func.func @_mlp_kernel(%arg0: memref<8x8xf32, #tpu.memory_space<vmem>>, %arg1: memref<8x128xf32, #tpu.memory_space<vmem>>, %arg2: memref<128x128xf32, #tpu.memory_space<vmem>>, %arg3: memref<8x128xf32, #tpu.memory_space<vmem>>) attributes {dimension_semantics = [], scalar_prefetch = 0 : i64, scratch_operands = 0 : i64, tpu.core_type = #tpu.core_type<tc>} {
    %c0 = arith.constant 0 : index
    %c0_0 = arith.constant 0 : index
    %0 = vector.load %arg0[%c0, %c0_0] : memref<8x8xf32, #tpu.memory_space<vmem>>, vector<8x8xf32>
    %c0_1 = arith.constant 0 : index
    %c0_2 = arith.constant 0 : index
    %1 = vector.load %arg1[%c0_1, %c0_2] : memref<8x128xf32, #tpu.memory_space<vmem>>, vector<8x128xf32>
    %cst = arith.constant dense<0.000000e+00> : vector<8x128xf32>
    %2 = tpu.matmul %0, %1, %cst {dimension_numbers = #tpu.dot_dimension_numbers<[1], [0], [0], [1], [0, 0, 1, 1], [], []>} : vector<8x8xf32>, vector<8x128xf32>, vector<8x128xf32> -> vector<8x128xf32>
    %cst_3 = arith.constant 0.000000e+00 : f32
    %3 = vector.broadcast %cst_3 : f32 to vector<8x128xf32>
    %4 = arith.maximumf %2, %3 : vector<8x128xf32>
    %c0_4 = arith.constant 0 : index
    %c0_5 = arith.constant 0 : index
    %5 = vector.load %arg2[%c0_4, %c0_5] : memref<128x128xf32, #tpu.memory_space<vmem>>, vector<128x128xf32>
    %cst_6 = arith.constant dense<0.000000e+00> : vector<8x128xf32>
    %6 = tpu.matmul %4, %5, %cst_6 {dimension_numbers = #tpu.dot_dimension_numbers<[1], [0], [0], [1], [0, 0, 1, 1], [], []>} : vector<8x128xf32>, vector<128x128xf32>, vector<8x128xf32> -> vector<8x128xf32>
    %c0_7 = arith.constant 0 : index
    %c0_8 = arith.constant 0 : index
    %7 = vector.load %arg3[%c0_7, %c0_8] : memref<8x128xf32, #tpu.memory_space<vmem>>, vector<8x128xf32>
    tpu.vector_store %arg3[%c0_7, %c0_8], %6 {strides = array<i32>} : memref<8x128xf32, #tpu.memory_space<vmem>>, vector<8x128xf32>,
    return
  }
}

</mosaic_0001>

<bundles_post_ra>
// kernel: network_forward.1
= control target key start
LH: loop header
LB: loop body
LE: loop exit
PB: predicated region body
PF: predicated region fallthrough
CT: control target
= control target key end

     0   :  { %8 = vsyncpa [#allocation3], 0  ;;  %s311_s12 = smov [#allocation2]   ;;  %s358_s0 = inlined_call_operand.vmem [shape: f32[8,8], index: 0, kind: input, shape index: {}]   ;;  %s359_s1 = inlined_call_operand.vmem [shape: f32[8,128], index: 1, kind: input, shape index: {}]   ;;  %s360_s2 = inlined_call_operand.hbm [shape: f32[128,128], index: 2, kind: input, shape index: {}]   ;;  %s361_s3 = inlined_call_operand.vmem [shape: f32[8,128], index: 3, kind: output, shape index: {}]  }
   0x1   :  { %s18_s13 = sshll.u32 %s311_s12, 4  ;;  %s287_s16 = scalar_lea.hbm %s360_s2, 2048  ;;  %s19_s13 = int_to_ptr.vmem [resolvable:$true] %s18_s13 }
   0x2   :  { %p288_p0 = scmp.ne.s32.totalorder %s360_s2, %s287_s16  ;;  %p291_p1 = scmp.lt.u32.totalorder %s287_s16, %s360_s2 }
   0x4   :  { %p293_p2 = pnand %p291_p1, %p288_p0 }
   0x6   :  { %296 = shalt.err (!%p293_p2)
}
   0x7   :  { %s297_s21 = scalar_lea.vmem %s19_s13, 2048  ;;  %p302_p4 = scmp.lt.s32.totalorder %s19_s13, %s19_s13 }
   0x8   :  { %p298_p3 = scmp.ne.s32.totalorder %s19_s13, %s297_s21  ;;  %p303_p5 = scmp.lt.s32.totalorder %s297_s21, %s297_s21 }
   0xa   :  { %p304_p6 = por %p303_p5, %p302_p4 }
   0xc   :  { %p305_p7 = pnand %p304_p6, %p298_p3 }
   0xe   :  { %308 = shalt.err (!%p305_p7)
}
   0xf   :  { %s312_s22 = smov 128   ;;  %s313_s23 = smov 8  }
  0x10   :  { %24 = dma.hbm_to_vmem [thread:$0]  %s360_s2, 2048, %s19_s13, [#allocation3], %s312_s22, %s312_s22, %s313_s23  }
  0x11   :  { %309 = dma.done.wait [#allocation3], 2048  }
  0x12   :  { %310 = vsyncadd [#allocation3], 4294965248  ;;  %v314_v0 = vmov 0.0   ;;  %vm315_vm0 = vmmov 0   ;;  %v316_v1 = vmov 0.0|0.0   ;;  %vm30_vm1 = vcmask 64512  }
  0x13   :  { %217 = vmatprep.subr.mxu0 %v314_v0  ;;  %219 = vmatprep.mubr.msk.f32.mxu0 %vm315_vm0, %v314_v0  ;;  %v29_v2 = vld [vmem:[%s359_s1] sm:$0xff]  ;;  %v106_v5 = vld [vmem:[#allocation2 + $0x8] sm:$0xff]  ;;  %v107_v6 = vld [vmem:[#allocation2 + $0x10] sm:$0xff] }
  0x14   :  { %257 = vmatprep.subr.bf16.mxu1 %v316_v1  ;;  %254 = vmatprep.mubr.msk.f32.mxu1 %vm315_vm0, %v314_v0  ;;  %v28_v3 = vld [vmem:[%s358_s0] sm:$0xff]  ;;  %v108_v7 = vld [vmem:[#allocation2 + $0x18] sm:$0xff]  ;;  %v110_v11 = vld [vmem:[#allocation2 + $0x28] sm:$0xff] }
  0x15   :  { %v105_v4 = vld [vmem:[#allocation2] sm:$0xff]  ;;  %218 = vmatpush3.msra.mxu0 %v29_v2  ;;  %v261_v9 = vpack.c.bf16 %v108_v7, %v107_v6  ;;  %v111_v13 = vld [vmem:[#allocation2 + $0x30] sm:$0xff]  ;;  %v112_v14 = vld [vmem:[#allocation2 + $0x38] sm:$0xff] }
  0x16   :  { %220 = vmatmul.mubr.msk.f32.vlgmr.msra.gmra.mrb[0].mxu0 %vm30_vm1, %v28_v3  ;;  %v258_v8 = vpack.c.bf16 %v106_v5, %v105_v4  ;;  %v109_v10 = vld [vmem:[#allocation2 + $0x20] sm:$0xff]  ;;  %v267_v15 = vpack.c.bf16 %v112_v14, %v111_v13  ;;  %v114_v17 = vld [vmem:[#allocation2 + $0x48] sm:$0xff]  ;;  %v115_v19 = vld [vmem:[#allocation2 + $0x50] sm:$0xff] }
  0x17   :  { %v264_v12 = vpack.c.bf16 %v110_v11, %v109_v10  ;;  %v113_v16 = vld [vmem:[#allocation2 + $0x40] sm:$0xff]  ;;  %v116_v20 = vld [vmem:[#allocation2 + $0x58] sm:$0xff]  ;;  %v118_v23 = vld [vmem:[#allocation2 + $0x68] sm:$0xff] }
  0x18   :  { %259 = vmatpush3.bf16.msra.mxu1 %v258_v8  ;;  %v270_v18 = vpack.c.bf16 %v114_v17, %v113_v16  ;;  %v273_v21 = vpack.c.bf16 %v116_v20, %v115_v19  ;;  %v117_v22 = vld [vmem:[#allocation2 + $0x60] sm:$0xff]  ;;  %v119_v25 = vld [vmem:[#allocation2 + $0x70] sm:$0xff]  ;;  %v120_v26 = vld [vmem:[#allocation2 + $0x78] sm:$0xff] }
  0x19   :  { %260 = vmatprep.subr.bf16.mxu1 %v316_v1  ;;  %v276_v24 = vpack.c.bf16 %v118_v23, %v117_v22  ;;  %v279_v27 = vpack.c.bf16 %v120_v26, %v119_v25 }
  0x1c   :  { %262 = vmatpush3.bf16.msra.mxu1 %v261_v9 }
  0x1d   :  { %263 = vmatprep.subr.bf16.mxu1 %v316_v1 }
  0x20   :  { %265 = vmatpush3.bf16.msra.mxu1 %v264_v12 }
  0x21   :  { %266 = vmatprep.subr.bf16.mxu1 %v316_v1 }
  0x24   :  { %268 = vmatpush3.bf16.msra.mxu1 %v267_v15 }
  0x25   :  { %269 = vmatprep.subr.bf16.mxu1 %v316_v1 }
  0x28   :  { %271 = vmatpush3.bf16.msra.mxu1 %v270_v18 }
  0x29   :  { %272 = vmatprep.subr.bf16.mxu1 %v316_v1 }
  0x2c   :  { %274 = vmatpush3.bf16.msra.mxu1 %v273_v21 }
  0x2d   :  { %275 = vmatprep.subr.bf16.mxu1 %v316_v1 }
  0x30   :  { %277 = vmatpush3.bf16.msra.mxu1 %v276_v24 }
  0x31   :  { %278 = vmatprep.subr.bf16.mxu1 %v316_v1 }
  0x34   :  { %280 = vmatpush3.bf16.msra.mxu1 %v279_v27 }
  0xe9   :  { %v100_v28 = vpop.f32.mrb[0].mxu0 }
  0xea   :  { %v104_v29 = vmax.f32 %v100_v28, 0.0  ;;  %v221_v30 = vpop.f32.mrb[1].mxu0 }
  0xec   :  { %255 = vmatmul.mubr.f32.vlgmr.msra.gmra.mrb[0].mxu1 %v104_v29 }
 0x1bf   :  { %v187_v31 = vpop.f32.mrb[0].mxu1 }
 0x1c0   :  { %191 = vst [vmem:[%s361_s3] sm:$0xff] %v187_v31  ;;  %v256_v32 = vpop.f32.mrb[1].mxu1 }
 0x1c1   :  { %196 = vsyncpa [#allocation3], 1 }

</bundles_post_ra>
